<compile_context>
chip_gen: v7x
topology: tpu7x:2x2x1
jax: 0.10.0
libtpu: 0.0.40
codegen_flags: <defaults>
</compile_context>

<pallas_src>
import functools

import jax
import jax.numpy as jnp
from jax import lax
from jax.experimental import pallas as pl
from jax.experimental.pallas import tpu as pltpu

_INV_SQRT2 = 0.7071067811865476
_MIB = 1024 * 1024


def _round_up(n, m):
    return ((n + m - 1) // m) * m


def _lane_pad_dim(d):
    # v6e/v7x MXUs are 2x256x256: pad the feature (lane / K / N) dim to a 256 multiple when
    # it is large enough; 128 is sufficient (and avoids waste) for small D / v5e's 4x128x128.
    return _round_up(d, 256) if d >= 256 else _round_up(d, 128)


def _compiler_params(dimension_semantics, vmem_estimate_bytes):
    # Raise the scoped VMEM limit above the 16/32 MiB defaults when the working set needs it
    # (esp. v5e's 16 MiB default); cap at 64 MiB which is valid on every generation (v7x
    # physical VMEM is 64 MiB, v5e/v6e have 128 MiB).
    limit = int(min(64 * _MIB, max(32 * _MIB, vmem_estimate_bytes)))
    return pltpu.CompilerParams(dimension_semantics=dimension_semantics,
                                vmem_limit_bytes=limit)


# --------------------------------------------------------------------------------------
# GlobalChannelPooling, stage 1: seq-tiled mean / max pooling with running f32 scratch.
# --------------------------------------------------------------------------------------
def gcp_pool_kernel(x_ref, mean_ref, max_ref, sum_sc, max_sc, *,
                    seq_len, seq_tile, needs_mask):
    """grid = (B, n_seq_tiles); x_ref: (TSP, Dp) seq tile of one batch element."""
    si = pl.program_id(1)

    @pl.when(si == 0)
    def _init():
        sum_sc[...] = jnp.zeros(sum_sc.shape, sum_sc.dtype)
        max_sc[...] = jnp.full(max_sc.shape, -jnp.inf, max_sc.dtype)

    x = x_ref[...].astype(jnp.float32)                         # (TSP, Dp)
    if needs_mask:
        row = seq_tile * si + lax.broadcasted_iota(jnp.int32, x.shape, 0)
        valid = row < seq_len
        x_sum = jnp.where(valid, x, 0.0)
        x_max = jnp.where(valid, x, -jnp.inf)
    else:
        x_sum, x_max = x, x

    sum_sc[...] = sum_sc[...] + jnp.sum(x_sum, axis=0, keepdims=True)
    max_sc[...] = jnp.maximum(max_sc[...], jnp.max(x_max, axis=0, keepdims=True))

    @pl.when(si == pl.num_programs(1) - 1)
    def _finalize():
        mean_ref[...] = sum_sc[...] * jnp.float32(1.0 / seq_len)
        max_ref[...] = max_sc[...]


# --------------------------------------------------------------------------------------
# GlobalChannelPooling, stage 2: batched projection + sigmoid (single-step Pallas GEMM).
#   sigmoid(concat(mean, max) @ Wg.T + bg) == sigmoid(mean @ Wa.T + max @ Wm.T + bg)
# --------------------------------------------------------------------------------------
def gcp_gate_proj_kernel(mean_ref, max_ref, wa_ref, wm_ref, b_ref, gate_ref):
    y = jnp.dot(mean_ref[...], wa_ref[...], preferred_element_type=jnp.float32)
    y = y + jnp.dot(max_ref[...], wm_ref[...], preferred_element_type=jnp.float32)
    y = y + b_ref[...]
    gate_ref[...] = jax.nn.sigmoid(y).astype(gate_ref.dtype)


def gcp_gate(x, w_g, b_g, *, pool_seq_tile=512):
    """x: (B, S, D); w_g: (D, 2D) (PyTorch Linear(2D, D).weight); b_g: (D,).

    Returns the sigmoid channel gate, shape (B, 1, Dp) with the feature dim zero-padded
    to the MXU lane multiple (so it feeds the fused LinearRes kernel directly).
    """
    B, S, D = x.shape
    assert w_g.shape == (D, 2 * D)
    Dp = _lane_pad_dim(D)
    xb = x.dtype.itemsize

    TSP = min(_round_up(pool_seq_tile, 8), _round_up(S, 8))
    Sp = _round_up(S, TSP)
    needs_mask = Sp != S

    xp = x
    if Sp != S or Dp != D:
        xp = jnp.pad(x, ((0, 0), (0, Sp - S), (0, Dp - D)))

    pool_kernel = functools.partial(gcp_pool_kernel, seq_len=S, seq_tile=TSP,
                                    needs_mask=needs_mask)
    pool_vmem = 2 * TSP * Dp * xb + 4 * TSP * Dp * 4 + 16 * Dp * 4
    mean, mx = pl.pallas_call(
        pool_kernel,
        out_shape=(jax.ShapeDtypeStruct((B, 1, Dp), jnp.float32),
                   jax.ShapeDtypeStruct((B, 1, Dp), jnp.float32)),
        grid=(B, Sp // TSP),
        in_specs=[pl.BlockSpec((None, TSP, Dp), lambda b, s: (b, s, 0))],
        out_specs=[pl.BlockSpec((None, 1, Dp), lambda b, s: (b, 0, 0)),
                   pl.BlockSpec((None, 1, Dp), lambda b, s: (b, 0, 0))],
        scratch_shapes=[pltpu.VMEM((1, Dp), jnp.float32),
                        pltpu.VMEM((1, Dp), jnp.float32)],
        compiler_params=_compiler_params(("parallel", "arbitrary"), pool_vmem),
        cost_estimate=pl.CostEstimate(flops=int(2 * B * Sp * Dp), transcendentals=0,
                                      bytes_accessed=int(B * Sp * Dp * xb + 2 * B * Dp * 4)),
    )(xp)

    # Split the concat-projection weight once and pre-transpose once (NN contraction in the
    # kernel).  The gate projection stays f32: it is tiny and keeps the gate numerics exact.
    w_avg_t = w_g[:, :D].T.astype(jnp.float32)
    w_max_t = w_g[:, D:].T.astype(jnp.float32)
    bias = b_g.astype(jnp.float32)
    if Dp != D:
        w_avg_t = jnp.pad(w_avg_t, ((0, Dp - D), (0, Dp - D)))
        w_max_t = jnp.pad(w_max_t, ((0, Dp - D), (0, Dp - D)))
        bias = jnp.pad(bias, ((0, Dp - D),))
    bias2 = bias.reshape(1, Dp)

    proj_vmem = 4 * Dp * Dp * 4 + 8 * B * Dp * 4
    gate = pl.pallas_call(
        gcp_gate_proj_kernel,
        out_shape=jax.ShapeDtypeStruct((B, Dp), x.dtype),
        grid=(1,),
        in_specs=[
            pl.BlockSpec((B, Dp), lambda i: (0, 0)),
            pl.BlockSpec((B, Dp), lambda i: (0, 0)),
            pl.BlockSpec((Dp, Dp), lambda i: (0, 0)),
            pl.BlockSpec((Dp, Dp), lambda i: (0, 0)),
            pl.BlockSpec((1, Dp), lambda i: (0, 0)),
        ],
        out_specs=pl.BlockSpec((B, Dp), lambda i: (0, 0)),
        compiler_params=_compiler_params(("arbitrary",), proj_vmem),
        cost_estimate=pl.CostEstimate(flops=int(4 * B * Dp * Dp),
                                      transcendentals=int(B * Dp),
                                      bytes_accessed=int(2 * Dp * Dp * 4 + 5 * B * Dp * 4)),
    )(mean.reshape(B, Dp), mx.reshape(B, Dp), w_avg_t, w_max_t, bias2)

    return gate.reshape(B, 1, Dp)


# --------------------------------------------------------------------------------------
# Fused gating + LinearRes:  z = x * gate;  out = GELU(z @ W.T + b) + z
# --------------------------------------------------------------------------------------
def gated_linear_res_kernel(x_ref, gate_ref, w_ref, b_ref, o_ref, *,
                            approximate_gelu, mxu_dtype):
    """One (TR, Dp) row tile per grid step.

    x_ref:    (TR, Dp)   row tile (rows = flattened batch*seq)
    gate_ref: (1, Dp) or (TR, Dp)  channel gate (broadcast over rows / per-row)
    w_ref:    (Dp, Dp)   pre-transposed weight W.T, VMEM-resident across the grid
    b_ref:    (1, Dp)    f32 bias
    o_ref:    (TR, Dp)
    """
    z = x_ref[...] * gate_ref[...]                         # gating in native dtype (VPU)
    zm = z if mxu_dtype is None else z.astype(mxu_dtype)   # bf16 MXU feed (f32 acc below)
    y = jnp.dot(zm, w_ref[...], preferred_element_type=jnp.float32)
    y = y + b_ref[...]
    if approximate_gelu:
        g = jax.nn.gelu(y, approximate=True)               # tanh -> EUP (optional)
    else:
        # exact erf GELU (matches PyTorch nn.GELU default)
        g = 0.5 * y * (1.0 + lax.erf(y * jnp.float32(_INV_SQRT2)))
    o_ref[...] = (g + z.astype(jnp.float32)).astype(o_ref.dtype)


def gated_linear_res(x, gate_pad, w, b, *, seq_tile=512,
                     mxu_dtype=jnp.bfloat16, approximate_gelu=False):
    """x: (B, S, D); gate_pad: (B, 1, Dp); w: (D, D) (PyTorch (out,in)); b: (D,).

    Returns GELU((x*gate) @ W.T + b) + (x*gate), shape (B, S, D).
    mxu_dtype=None keeps the exact input-dtype matmul path.
    """
    B, S, D = x.shape
    assert w.shape == (D, D), "residual add requires out_dim == in_dim"
    Dp = _lane_pad_dim(D)
    assert gate_pad.shape == (B, 1, Dp)
    xb = x.dtype.itemsize

    seq_tile = max(8, _round_up(seq_tile, 8))
    S8 = _round_up(S, 8)

    # Weight: pre-transposed once (NN contraction -> no per-step transpose) and pre-cast once
    # (bf16 default: native MXU speed, half the resident-weight VMEM).
    w_dtype = x.dtype if mxu_dtype is None else mxu_dtype
    w_t = w.T.astype(w_dtype)
    bias = b.astype(jnp.float32)
    if Dp != D:
        w_t = jnp.pad(w_t, ((0, Dp - D), (0, Dp - D)))
        bias = jnp.pad(bias, ((0, Dp - D),))
    bias2 = bias.reshape(1, Dp)

    if S8 >= seq_tile:
        # Large-S path: tile the sequence; every row of a tile belongs to one batch element,
        # so the (1, Dp) gate block broadcasts over the tile (no gate expansion traffic).
        TR = seq_tile
        Sp = _round_up(S, TR)
        rows = B * Sp
        rows_p = rows
        xr = x
        if Sp != S or Dp != D:
            xr = jnp.pad(x, ((0, 0), (0, Sp - S), (0, Dp - D)))
        xr = xr.reshape(rows, Dp)
        gate_arg = gate_pad                                     # (B, 1, Dp)
        n_per_b = Sp // TR
        gate_spec = pl.BlockSpec((None, 1, Dp), lambda r: (r // n_per_b, 0, 0))
        gate_bytes = B * Dp * xb
    else:
        # Small-S path (perf review): fold batch*seq into one row axis so each grid step feeds
        # the MXU a full-height tile instead of S (<seq_tile) rows.  The per-row gate is
        # materialized once; for small S this extra traffic is negligible versus the per-step
        # overhead / MXU underfill it removes.
        Sp = S8
        rows = B * Sp
        TR = min(seq_tile, rows)
        rows_p = _round_up(rows, TR)
        xr = x
        if Sp != S or Dp != D:
            xr = jnp.pad(x, ((0, 0), (0, Sp - S), (0, Dp - D)))
        xr = xr.reshape(rows, Dp)
        gate_rows = jnp.broadcast_to(gate_pad, (B, Sp, Dp)).reshape(rows, Dp)
        if rows_p != rows:
            xr = jnp.pad(xr, ((0, rows_p - rows), (0, 0)))
            gate_rows = jnp.pad(gate_rows, ((0, rows_p - rows), (0, 0)))
        gate_arg = gate_rows                                    # (rows_p, Dp)
        gate_spec = pl.BlockSpec((TR, Dp), lambda r: (r, 0))
        gate_bytes = rows_p * Dp * xb

    kernel = functools.partial(gated_linear_res_kernel,
                               approximate_gelu=approximate_gelu, mxu_dtype=mxu_dtype)

    # VMEM estimate: double-buffered x/out/gate tiles + resident W + f32 temporaries.
    # (W / bias use constant index maps, so they are DMA'd only once even though they get a
    #  second pipeline buffer; single-buffering them via pl.Buffered(1) is a further option.)
    glr_vmem = (4 * TR * Dp * xb + 2 * TR * Dp * xb
                + 2 * Dp * Dp * w_t.dtype.itemsize
                + 4 * TR * Dp * 4 + 16 * Dp * 4)
    out = pl.pallas_call(
        kernel,
        out_shape=jax.ShapeDtypeStruct((rows_p, Dp), x.dtype),
        grid=(rows_p // TR,),
        in_specs=[
            pl.BlockSpec((TR, Dp), lambda r: (r, 0)),      # x rows (pipelined)
            gate_spec,                                     # channel gate
            pl.BlockSpec((Dp, Dp), lambda r: (0, 0)),      # W.T (VMEM-resident)
            pl.BlockSpec((1, Dp), lambda r: (0, 0)),       # bias (VMEM-resident)
        ],
        out_specs=pl.BlockSpec((TR, Dp), lambda r: (r, 0)),
        compiler_params=_compiler_params(("parallel",), glr_vmem),
        cost_estimate=pl.CostEstimate(
            flops=int(2 * rows_p * Dp * Dp + 4 * rows_p * Dp),
            transcendentals=int(rows_p * Dp),
            bytes_accessed=int(2 * rows_p * Dp * xb + Dp * Dp * w_t.dtype.itemsize
                               + gate_bytes + Dp * 4)),
    )(xr, gate_arg, w_t, bias2)

    return out[:rows].reshape(B, Sp, Dp)[:, :S, :D]


# --------------------------------------------------------------------------------------
# MiT forward
# --------------------------------------------------------------------------------------
def mit_forward(x_i, x_o, params, *, seq_tile=512, pool_seq_tile=512,
                mxu_dtype=jnp.bfloat16, approximate_gelu=False):
    """params keys:
      'w_li','b_li','w_lo','b_lo' : LinearRes Linear weights/biases, (D, D) / (D,)
      'wg_i','bg_i','wg_o','bg_o' : GlobalChannelPooling projection weights/biases, (D, 2D) / (D,)
    Returns (mix_i, mix_o), each (B, S, D).
    mxu_dtype=jnp.bfloat16 feeds the LinearRes MXU in bf16 (f32 accumulation / epilogue);
    mxu_dtype=None gives the exact input-dtype matmul path.
    """
    gate_i = gcp_gate(x_o, params["wg_i"], params["bg_i"], pool_seq_tile=pool_seq_tile)
    gate_o = gcp_gate(x_i, params["wg_o"], params["bg_o"], pool_seq_tile=pool_seq_tile)
    mix_i = gated_linear_res(x_i, gate_i, params["w_li"], params["b_li"],
                             seq_tile=seq_tile, mxu_dtype=mxu_dtype,
                             approximate_gelu=approximate_gelu)
    mix_o = gated_linear_res(x_o, gate_o, params["w_lo"], params["b_lo"],
                             seq_tile=seq_tile, mxu_dtype=mxu_dtype,
                             approximate_gelu=approximate_gelu)
    return mix_i, mix_o


# --------------------------------------------------------------------------------------
# Pure-JAX reference (mirrors the PyTorch module in eval mode)
# --------------------------------------------------------------------------------------
def mit_reference(x_i, x_o, params):
    def gcp(x, w_g, b_g):
        avg = jnp.mean(x, axis=1, keepdims=True)
        mx = jnp.max(x, axis=1, keepdims=True)
        pooled = jnp.concatenate([avg, mx], axis=-1)           # (B, 1, 2D)
        return jax.nn.sigmoid(pooled @ w_g.T + b_g)            # (B, 1, D)

    def linear_res(z, w, b):
        y = z @ w.T + b
        g = 0.5 * y * (1.0 + lax.erf(y * jnp.float32(_INV_SQRT2)))
        return g + z

    gi = gcp(x_o, params["wg_i"], params["bg_i"])
    go = gcp(x_i, params["wg_o"], params["bg_o"])
    mix_i = linear_res(x_i * gi, params["w_li"], params["b_li"])
    mix_o = linear_res(x_o * go, params["w_lo"], params["b_lo"])
    return mix_i, mix_o


if __name__ == "__main__":
    def make_params(key, D):
        keys = jax.random.split(key, 8)

        def linear_init(kw, kb, out_dim, in_dim):
            bound = 1.0 / jnp.sqrt(jnp.float32(in_dim))
            wgt = jax.random.uniform(kw, (out_dim, in_dim), minval=-bound, maxval=bound,
                                     dtype=jnp.float32)
            bias = jax.random.uniform(kb, (out_dim,), minval=-bound, maxval=bound,
                                      dtype=jnp.float32)
            return wgt, bias

        w_li, b_li = linear_init(keys[0], keys[1], D, D)
        w_lo, b_lo = linear_init(keys[2], keys[3], D, D)
        wg_i, bg_i = linear_init(keys[4], keys[5], D, 2 * D)
        wg_o, bg_o = linear_init(keys[6], keys[7], D, 2 * D)
        return dict(w_li=w_li, b_li=b_li, w_lo=w_lo, b_lo=b_lo,
                    wg_i=wg_i, bg_i=bg_i, wg_o=wg_o, bg_o=bg_o)

    def check(fwd, x_i, x_o, params, atol, rtol, tag):
        mix_i, mix_o = jax.block_until_ready(fwd(x_i, x_o, params))
        ref_i, ref_o = mit_reference(x_i, x_o, params)
        assert mix_i.shape == x_i.shape and mix_o.shape == x_o.shape, tag
        assert jnp.allclose(mix_i, ref_i, atol=atol, rtol=rtol), f"mix_i mismatch ({tag})"
        assert jnp.allclose(mix_o, ref_o, atol=atol, rtol=rtol), f"mix_o mismatch ({tag})"

    key = jax.random.PRNGKey(0)
    k1, k2, k3, k4, k5, k6 = jax.random.split(key, 6)

    # Config 1: main small shape (batch=2, seq=8, hidden=128); exercises the row-folded path.
    B, S, D = 2, 8, 128
    x_i = jax.random.normal(k1, (B, S, D), dtype=jnp.float32)
    x_o = jax.random.normal(k2, (B, S, D), dtype=jnp.float32)
    params = make_params(k3, D)

    fwd_exact = jax.jit(functools.partial(mit_forward, mxu_dtype=None))
    check(fwd_exact, x_i, x_o, params, atol=1e-3, rtol=1e-3, tag="cfg1-exact")

    fwd_bf16 = jax.jit(mit_forward)   # default: bf16 MXU feed, f32 accumulation/epilogue
    check(fwd_bf16, x_i, x_o, params, atol=1e-2, rtol=1e-2, tag="cfg1-bf16")

    # Config 2: non-128 hidden + ragged seq -> lane padding, seq padding with masked pooling,
    # multi-tile pooling reduction, and the seq-tiled (non-folded) LinearRes path.
    B2, S2, D2 = 3, 20, 96
    x_i2 = jax.random.normal(k4, (B2, S2, D2), dtype=jnp.float32)
    x_o2 = jax.random.normal(k5, (B2, S2, D2), dtype=jnp.float32)
    params2 = make_params(k6, D2)
    fwd2 = jax.jit(functools.partial(mit_forward, seq_tile=16, pool_seq_tile=8,
                                     mxu_dtype=None))
    check(fwd2, x_i2, x_o2, params2, atol=1e-3, rtol=1e-3, tag="cfg2-exact")

    # Config 3: tiny seq with row padding in the folded path + masked single-tile pooling.
    B3, S3, D3 = 3, 4, 64
    x_i3 = jax.random.normal(jax.random.PRNGKey(7), (B3, S3, D3), dtype=jnp.float32)
    x_o3 = jax.random.normal(jax.random.PRNGKey(8), (B3, S3, D3), dtype=jnp.float32)
    params3 = make_params(jax.random.PRNGKey(9), D3)
    fwd3 = jax.jit(functools.partial(mit_forward, seq_tile=16, pool_seq_tile=8,
                                     mxu_dtype=None))
    check(fwd3, x_i3, x_o3, params3, atol=1e-3, rtol=1e-3, tag="cfg3-exact")

    print("KERNEL_OK")
</pallas_src>

<mosaic_0001>
module attributes {stable_mosaic.version = 11 : i64} {
  func.func @gcp_gate_proj_kernel(%arg0: i32, %arg1: memref<2x128xf32, #tpu.memory_space<vmem>>, %arg2: memref<2x128xf32, #tpu.memory_space<vmem>>, %arg3: memref<128x128xf32, #tpu.memory_space<vmem>>, %arg4: memref<128x128xf32, #tpu.memory_space<vmem>>, %arg5: memref<1x128xf32, #tpu.memory_space<vmem>>, %arg6: memref<2x128xf32, #tpu.memory_space<vmem>>) attributes {dimension_semantics = [#tpu.dimension_semantics<arbitrary>], iteration_bounds = array<i64: 1>, scalar_prefetch = 0 : i64, scratch_operands = 0 : i64, tpu.core_type = #tpu.core_type<tc>, window_params = [{pipeline_mode = #tpu.pipeline_mode<synchronous>, transform_indices = @transform_0, window_bounds = array<i64: 2, 128>}, {pipeline_mode = #tpu.pipeline_mode<synchronous>, transform_indices = @transform_1, window_bounds = array<i64: 2, 128>}, {pipeline_mode = #tpu.pipeline_mode<synchronous>, transform_indices = @transform_2, window_bounds = array<i64: 128, 128>}, {pipeline_mode = #tpu.pipeline_mode<synchronous>, transform_indices = @transform_3, window_bounds = array<i64: 128, 128>}, {pipeline_mode = #tpu.pipeline_mode<synchronous>, transform_indices = @transform_4, window_bounds = array<i64: 1, 128>}, {pipeline_mode = #tpu.pipeline_mode<synchronous>, transform_indices = @transform_5, window_bounds = array<i64: 2, 128>}]} {
    %c0 = arith.constant 0 : index
    %c0_0 = arith.constant 0 : index
    %0 = vector.load %arg1[%c0, %c0_0] : memref<2x128xf32, #tpu.memory_space<vmem>>, vector<2x128xf32>
    %c0_1 = arith.constant 0 : index
    %c0_2 = arith.constant 0 : index
    %1 = vector.load %arg3[%c0_1, %c0_2] : memref<128x128xf32, #tpu.memory_space<vmem>>, vector<128x128xf32>
    %cst = arith.constant dense<0.000000e+00> : vector<2x128xf32>
    %2 = tpu.matmul %0, %1, %cst {dimension_numbers = #tpu.dot_dimension_numbers<[1], [0], [0], [1], [0, 0, 1, 1], [], []>} : vector<2x128xf32>, vector<128x128xf32>, vector<2x128xf32> -> vector<2x128xf32>
    %c0_3 = arith.constant 0 : index
    %c0_4 = arith.constant 0 : index
    %3 = vector.load %arg2[%c0_3, %c0_4] : memref<2x128xf32, #tpu.memory_space<vmem>>, vector<2x128xf32>
    %c0_5 = arith.constant 0 : index
    %c0_6 = arith.constant 0 : index
    %4 = vector.load %arg4[%c0_5, %c0_6] : memref<128x128xf32, #tpu.memory_space<vmem>>, vector<128x128xf32>
    %cst_7 = arith.constant dense<0.000000e+00> : vector<2x128xf32>
    %5 = tpu.matmul %3, %4, %cst_7 {dimension_numbers = #tpu.dot_dimension_numbers<[1], [0], [0], [1], [0, 0, 1, 1], [], []>} : vector<2x128xf32>, vector<128x128xf32>, vector<2x128xf32> -> vector<2x128xf32>
    %6 = arith.addf %2, %5 : vector<2x128xf32>
    %c0_8 = arith.constant 0 : index
    %c0_9 = arith.constant 0 : index
    %7 = vector.load %arg5[%c0_8, %c0_9] : memref<1x128xf32, #tpu.memory_space<vmem>>, vector<1x128xf32>
    %8 = vector.broadcast %7 : vector<1x128xf32> to vector<2x128xf32>
    %9 = arith.addf %6, %8 : vector<2x128xf32>
    %10 = arith.negf %9 : vector<2x128xf32>
    %11 = math.exp %10 : vector<2x128xf32>
    %cst_10 = arith.constant 1.000000e+00 : f32
    %12 = vector.broadcast %cst_10 : f32 to vector<2x128xf32>
    %13 = arith.addf %12, %11 : vector<2x128xf32>
    %14 = arith.divf %12, %13 : vector<2x128xf32>
    %c0_11 = arith.constant 0 : index
    %c0_12 = arith.constant 0 : index
    %15 = vector.load %arg6[%c0_11, %c0_12] : memref<2x128xf32, #tpu.memory_space<vmem>>, vector<2x128xf32>
    tpu.vector_store %arg6[%c0_11, %c0_12], %14 {strides = array<i32>} : memref<2x128xf32, #tpu.memory_space<vmem>>, vector<2x128xf32>,
    return
  }
  func.func @transform_0(%arg0: i32) -> (i32, i32) {
    %c0_i32 = arith.constant 0 : i32
    %c0_i32_0 = arith.constant 0 : i32
    %c0_i32_1 = arith.constant 0 : i32
    return %c0_i32, %c0_i32_0 : i32, i32
  }
  func.func @transform_1(%arg0: i32) -> (i32, i32) {
    %c0_i32 = arith.constant 0 : i32
    %c0_i32_0 = arith.constant 0 : i32
    %c0_i32_1 = arith.constant 0 : i32
    return %c0_i32, %c0_i32_0 : i32, i32
  }
  func.func @transform_2(%arg0: i32) -> (i32, i32) {
    %c0_i32 = arith.constant 0 : i32
    %c0_i32_0 = arith.constant 0 : i32
    %c0_i32_1 = arith.constant 0 : i32
    return %c0_i32, %c0_i32_0 : i32, i32
  }
  func.func @transform_3(%arg0: i32) -> (i32, i32) {
    %c0_i32 = arith.constant 0 : i32
    %c0_i32_0 = arith.constant 0 : i32
    %c0_i32_1 = arith.constant 0 : i32
    return %c0_i32, %c0_i32_0 : i32, i32
  }
  func.func @transform_4(%arg0: i32) -> (i32, i32) {
    %c0_i32 = arith.constant 0 : i32
    %c0_i32_0 = arith.constant 0 : i32
    %c0_i32_1 = arith.constant 0 : i32
    return %c0_i32, %c0_i32_0 : i32, i32
  }
  func.func @transform_5(%arg0: i32) -> (i32, i32) {
    %c0_i32 = arith.constant 0 : i32
    %c0_i32_0 = arith.constant 0 : i32
    %c0_i32_1 = arith.constant 0 : i32
    return %c0_i32, %c0_i32_0 : i32, i32
  }
}

module attributes {stable_mosaic.version = 11 : i64} {
  func.func @gcp_pool_kernel(%arg0: i32, %arg1: i32, %arg2: memref<1x8x128xf32, #tpu.memory_space<vmem>>, %arg3: memref<1x1x128xf32, #tpu.memory_space<vmem>>, %arg4: memref<1x1x128xf32, #tpu.memory_space<vmem>>, %arg5: memref<1x128xf32, #tpu.memory_space<vmem>>, %arg6: memref<1x128xf32, #tpu.memory_space<vmem>>) attributes {dimension_semantics = [#tpu.dimension_semantics<parallel>, #tpu.dimension_semantics<arbitrary>], iteration_bounds = array<i64: 2, 1>, scalar_prefetch = 0 : i64, scratch_operands = 2 : i64, tpu.core_type = #tpu.core_type<tc>, window_params = [{transform_indices = @transform_0, window_bounds = array<i64: 1, 8, 128>}, {transform_indices = @transform_1, window_bounds = array<i64: 1, 1, 128>}, {transform_indices = @transform_2, window_bounds = array<i64: 1, 1, 128>}]} {
    %c0_i32 = arith.constant 0 : i32
    %0 = arith.cmpi eq, %arg1, %c0_i32 : i32
    %1 = arith.extui %0 : i1 to i32
    %c0_i32_0 = arith.constant 0 : i32
    %2 = arith.cmpi ne, %1, %c0_i32_0 : i32
    scf.if %2 {
      %cst_14 = arith.constant 0.000000e+00 : f32
      %18 = vector.broadcast %cst_14 : f32 to vector<1x128xf32>
      %c0_15 = arith.constant 0 : index
      %c0_16 = arith.constant 0 : index
      %19 = vector.load %arg5[%c0_15, %c0_16] : memref<1x128xf32, #tpu.memory_space<vmem>>, vector<1x128xf32>
      tpu.vector_store %arg5[%c0_15, %c0_16], %18 {strides = array<i32>} : memref<1x128xf32, #tpu.memory_space<vmem>>, vector<1x128xf32>,
      %cst_17 = arith.constant 0xFF800000 : f32
      %20 = vector.broadcast %cst_17 : f32 to vector<1x128xf32>
      %c0_18 = arith.constant 0 : index
      %c0_19 = arith.constant 0 : index
      %21 = vector.load %arg6[%c0_18, %c0_19] : memref<1x128xf32, #tpu.memory_space<vmem>>, vector<1x128xf32>
      tpu.vector_store %arg6[%c0_18, %c0_19], %20 {strides = array<i32>} : memref<1x128xf32, #tpu.memory_space<vmem>>, vector<1x128xf32>,
    } else {
    }
    %c0 = arith.constant 0 : index
    %c0_1 = arith.constant 0 : index
    %c0_2 = arith.constant 0 : index
    %3 = vector.load %arg2[%c0, %c0_1, %c0_2] : memref<1x8x128xf32, #tpu.memory_space<vmem>>, vector<1x8x128xf32>
    %4 = vector.shape_cast %3 : vector<1x8x128xf32> to vector<8x128xf32>
    %c0_3 = arith.constant 0 : index
    %c0_4 = arith.constant 0 : index
    %5 = vector.load %arg5[%c0_3, %c0_4] : memref<1x128xf32, #tpu.memory_space<vmem>>, vector<1x128xf32>
    %cst = arith.constant dense<0.000000e+00> : vector<128xf32>
    %6 = vector.multi_reduction <add>, %4, %cst [0] : vector<8x128xf32> to vector<128xf32>
    %7 = vector.shape_cast %6 : vector<128xf32> to vector<1x128xf32>
    %8 = arith.addf %5, %7 : vector<1x128xf32>
    %c0_5 = arith.constant 0 : index
    %c0_6 = arith.constant 0 : index
    %9 = vector.load %arg5[%c0_5, %c0_6] : memref<1x128xf32, #tpu.memory_space<vmem>>, vector<1x128xf32>
    tpu.vector_store %arg5[%c0_5, %c0_6], %8 {strides = array<i32>} : memref<1x128xf32, #tpu.memory_space<vmem>>, vector<1x128xf32>,
    %c0_7 = arith.constant 0 : index
    %c0_8 = arith.constant 0 : index
    %10 = vector.load %arg6[%c0_7, %c0_8] : memref<1x128xf32, #tpu.memory_space<vmem>>, vector<1x128xf32>
    %cst_9 = arith.constant dense<0xFF800000> : vector<128xf32>
    %11 = vector.multi_reduction <maximumf>, %4, %cst_9 [0] : vector<8x128xf32> to vector<128xf32>
    %12 = vector.shape_cast %11 : vector<128xf32> to vector<1x128xf32>
    %13 = arith.maximumf %10, %12 : vector<1x128xf32>
    %c0_10 = arith.constant 0 : index
    %c0_11 = arith.constant 0 : index
    %14 = vector.load %arg6[%c0_10, %c0_11] : memref<1x128xf32, #tpu.memory_space<vmem>>, vector<1x128xf32>
    tpu.vector_store %arg6[%c0_10, %c0_11], %13 {strides = array<i32>} : memref<1x128xf32, #tpu.memory_space<vmem>>, vector<1x128xf32>,
    %c0_i32_12 = arith.constant 0 : i32
    %15 = arith.cmpi eq, %arg1, %c0_i32_12 : i32
    %16 = arith.extui %15 : i1 to i32
    %c0_i32_13 = arith.constant 0 : i32
    %17 = arith.cmpi ne, %16, %c0_i32_13 : i32
    scf.if %17 {
      %c0_14 = arith.constant 0 : index
      %c0_15 = arith.constant 0 : index
      %18 = vector.load %arg5[%c0_14, %c0_15] : memref<1x128xf32, #tpu.memory_space<vmem>>, vector<1x128xf32>
      %cst_16 = arith.constant 1.250000e-01 : f32
      %19 = vector.broadcast %cst_16 : f32 to vector<1x128xf32>
      %20 = arith.mulf %18, %19 : vector<1x128xf32>
      %c0_17 = arith.constant 0 : index
      %c0_18 = arith.constant 0 : index
      %c0_19 = arith.constant 0 : index
      %21 = vector.load %arg3[%c0_17, %c0_18, %c0_19] : memref<1x1x128xf32, #tpu.memory_space<vmem>>, vector<1x1x128xf32>
      %22 = vector.shape_cast %21 : vector<1x1x128xf32> to vector<1x128xf32>
      %23 = vector.shape_cast %20 : vector<1x128xf32> to vector<1x1x128xf32>
      tpu.vector_store %arg3[%c0_17, %c0_18, %c0_19], %23 {strides = array<i32>} : memref<1x1x128xf32, #tpu.memory_space<vmem>>, vector<1x1x128xf32>,
      %c0_20 = arith.constant 0 : index
      %c0_21 = arith.constant 0 : index
      %24 = vector.load %arg6[%c0_20, %c0_21] : memref<1x128xf32, #tpu.memory_space<vmem>>, vector<1x128xf32>
      %c0_22 = arith.constant 0 : index
      %c0_23 = arith.constant 0 : index
      %c0_24 = arith.constant 0 : index
      %25 = vector.load %arg4[%c0_22, %c0_23, %c0_24] : memref<1x1x128xf32, #tpu.memory_space<vmem>>, vector<1x1x128xf32>
      %26 = vector.shape_cast %25 : vector<1x1x128xf32> to vector<1x128xf32>
      %27 = vector.shape_cast %24 : vector<1x128xf32> to vector<1x1x128xf32>
      tpu.vector_store %arg4[%c0_22, %c0_23, %c0_24], %27 {strides = array<i32>} : memref<1x1x128xf32, #tpu.memory_space<vmem>>, vector<1x1x128xf32>,
    } else {
    }
    return
  }
  func.func @transform_0(%arg0: i32, %arg1: i32) -> (i32, i32, i32) {
    %c0_i32 = arith.constant 0 : i32
    %c0_i32_0 = arith.constant 0 : i32
    return %arg0, %arg1, %c0_i32 : i32, i32, i32
  }
  func.func @transform_1(%arg0: i32, %arg1: i32) -> (i32, i32, i32) {
    %c0_i32 = arith.constant 0 : i32
    %c0_i32_0 = arith.constant 0 : i32
    %c0_i32_1 = arith.constant 0 : i32
    return %arg0, %c0_i32, %c0_i32_0 : i32, i32, i32
  }
  func.func @transform_2(%arg0: i32, %arg1: i32) -> (i32, i32, i32) {
    %c0_i32 = arith.constant 0 : i32
    %c0_i32_0 = arith.constant 0 : i32
    %c0_i32_1 = arith.constant 0 : i32
    return %arg0, %c0_i32, %c0_i32_0 : i32, i32, i32
  }
}

module attributes {stable_mosaic.version = 11 : i64} {
  func.func @gated_linear_res_kernel(%arg0: i32, %arg1: memref<16x128xf32, #tpu.memory_space<vmem>>, %arg2: memref<16x128xf32, #tpu.memory_space<vmem>>, %arg3: memref<128x128xf32, #tpu.memory_space<vmem>>, %arg4: memref<1x128xf32, #tpu.memory_space<vmem>>, %arg5: memref<16x128xf32, #tpu.memory_space<vmem>>) attributes {dimension_semantics = [#tpu.dimension_semantics<parallel>], iteration_bounds = array<i64: 1>, scalar_prefetch = 0 : i64, scratch_operands = 0 : i64, tpu.core_type = #tpu.core_type<tc>, window_params = [{transform_indices = @transform_0, window_bounds = array<i64: 16, 128>}, {transform_indices = @transform_1, window_bounds = array<i64: 16, 128>}, {pipeline_mode = #tpu.pipeline_mode<synchronous>, transform_indices = @transform_2, window_bounds = array<i64: 128, 128>}, {pipeline_mode = #tpu.pipeline_mode<synchronous>, transform_indices = @transform_3, window_bounds = array<i64: 1, 128>}, {transform_indices = @transform_4, window_bounds = array<i64: 16, 128>}]} {
    %c0 = arith.constant 0 : index
    %c0_0 = arith.constant 0 : index
    %0 = vector.load %arg1[%c0, %c0_0] : memref<16x128xf32, #tpu.memory_space<vmem>>, vector<16x128xf32>
    %c0_1 = arith.constant 0 : index
    %c0_2 = arith.constant 0 : index
    %1 = vector.load %arg2[%c0_1, %c0_2] : memref<16x128xf32, #tpu.memory_space<vmem>>, vector<16x128xf32>
    %2 = arith.mulf %0, %1 : vector<16x128xf32>
    %c0_3 = arith.constant 0 : index
    %c0_4 = arith.constant 0 : index
    %3 = vector.load %arg3[%c0_3, %c0_4] : memref<128x128xf32, #tpu.memory_space<vmem>>, vector<128x128xf32>
    %cst = arith.constant dense<0.000000e+00> : vector<16x128xf32>
    %4 = tpu.matmul %2, %3, %cst {dimension_numbers = #tpu.dot_dimension_numbers<[1], [0], [0], [1], [0, 0, 1, 1], [], []>} : vector<16x128xf32>, vector<128x128xf32>, vector<16x128xf32> -> vector<16x128xf32>
    %c0_5 = arith.constant 0 : index
    %c0_6 = arith.constant 0 : index
    %5 = vector.load %arg4[%c0_5, %c0_6] : memref<1x128xf32, #tpu.memory_space<vmem>>, vector<1x128xf32>
    %6 = vector.broadcast %5 : vector<1x128xf32> to vector<16x128xf32>
    %7 = arith.addf %4, %6 : vector<16x128xf32>
    %cst_7 = arith.constant 5.000000e-01 : f32
    %8 = vector.broadcast %cst_7 : f32 to vector<16x128xf32>
    %9 = arith.mulf %8, %7 : vector<16x128xf32>
    %cst_8 = arith.constant 0.707106769 : f32
    %10 = vector.broadcast %cst_8 : f32 to vector<16x128xf32>
    %11 = arith.mulf %7, %10 : vector<16x128xf32>
    %12 = math.erf %11 : vector<16x128xf32>
    %cst_9 = arith.constant 1.000000e+00 : f32
    %13 = vector.broadcast %cst_9 : f32 to vector<16x128xf32>
    %14 = arith.addf %13, %12 : vector<16x128xf32>
    %15 = arith.mulf %9, %14 : vector<16x128xf32>
    %16 = arith.addf %15, %2 : vector<16x128xf32>
    %c0_10 = arith.constant 0 : index
    %c0_11 = arith.constant 0 : index
    %17 = vector.load %arg5[%c0_10, %c0_11] : memref<16x128xf32, #tpu.memory_space<vmem>>, vector<16x128xf32>
    tpu.vector_store %arg5[%c0_10, %c0_11], %16 {strides = array<i32>} : memref<16x128xf32, #tpu.memory_space<vmem>>, vector<16x128xf32>,
    return
  }
  func.func @transform_0(%arg0: i32) -> (i32, i32) {
    %c0_i32 = arith.constant 0 : i32
    %c0_i32_0 = arith.constant 0 : i32
    return %arg0, %c0_i32 : i32, i32
  }
  func.func @transform_1(%arg0: i32) -> (i32, i32) {
    %c0_i32 = arith.constant 0 : i32
    %c0_i32_0 = arith.constant 0 : i32
    return %arg0, %c0_i32 : i32, i32
  }
  func.func @transform_2(%arg0: i32) -> (i32, i32) {
    %c0_i32 = arith.constant 0 : i32
    %c0_i32_0 = arith.constant 0 : i32
    %c0_i32_1 = arith.constant 0 : i32
    return %c0_i32, %c0_i32_0 : i32, i32
  }
  func.func @transform_3(%arg0: i32) -> (i32, i32) {
    %c0_i32 = arith.constant 0 : i32
    %c0_i32_0 = arith.constant 0 : i32
    %c0_i32_1 = arith.constant 0 : i32
    return %c0_i32, %c0_i32_0 : i32, i32
  }
  func.func @transform_4(%arg0: i32) -> (i32, i32) {
    %c0_i32 = arith.constant 0 : i32
    %c0_i32_0 = arith.constant 0 : i32
    return %arg0, %c0_i32 : i32, i32
  }
}

</mosaic_0001>

<bundles_post_ra>
// kernel: mit_forward.8
= control target key start
LH: loop header
LB: loop body
LE: loop exit
PB: predicated region body
PF: predicated region fallthrough
CT: control target
= control target key end

     0   :  { %s360_s9 = smov 0   ;;  %s362_s10 = smov 0   ;;  %s396_s0 = inlined_call_operand.vmem [shape: f32[2,8,128], index: 0, kind: input, shape index: {}]   ;;  %s397_s1 = inlined_call_operand.vmem [shape: f32[2,1,128], index: 1, kind: output, shape index: {0}]   ;;  %s398_s2 = inlined_call_operand.vmem [shape: f32[2,1,128], index: 2, kind: output, shape index: {1}]  }
   0x1   :  { %s364_s11 = smov 0  }
   0x2 LB: > { %s25_s12 = sadd.s32 1, %s337_s10  ;;  %p289_p0 = scmp.ge.s32.totalorder %s341_s11, 1  ;;  %s341_s11 = sphi %s364_s11, %s13_s11   ;;  %s337_s10 = sphi %s362_s10, %s400_s10   ;;  %s333_s9 = sphi %s360_s9, %s399_s9  }
   0x3   : > { %p27_p1 = scmp.ge.s32.totalorder %s25_s12, 2  ;;  %p131_p2 = scmp.lt.s32.totalorder %s341_s11, 3 }
   0x5   : > { %s402_s12 = smov (%p27_p1, %s25_s12), 0  ;;  %p132_p3 = pnand %p289_p0, %p131_p2 }
   0x6   : > { %p156_p4 = scmp.lt.s32.totalorder (!%p132_p3), %s333_s9, 1  ;;  %v343_v0 = vmov (!%p132_p3), 0.0   ;;  %v344_v1 = vmov (!%p132_p3), -inf  }
   0x7   : > { %135 = sbr.rel (%p132_p3) target bundleno = 43 (0x2b), region = 24  ;;  %173 = vst [vmem:[#allocation2] sm:$0x1] (!%p132_p3), %v343_v0  ;;  %174 = vst [vmem:[#allocation3] sm:$0x1] (!%p132_p3), %v344_v1 }
   0xe   : > { %s404_s9 = smov (!%p156_p4, %s333_s9), 1  ;;  %v176_v12 = vld [vmem:[#allocation2] sm:$0x1]  ;;  %v185_v13 = vld [vmem:[#allocation3] sm:$0x1] }
   0xf   : > { %s290_s13 = sshll.u32 %s404_s9, 3  ;;  %s168_s19 = scalar_lea.vmem %s398_s2, %s404_s9 }
  0x10   : > { %s162_s16 = scalar_lea.vmem %s396_s0, %s290_s13  ;;  %s165_s22 = scalar_lea.vmem %s397_s1, %s404_s9 }
  0x11   : > { %v175_v2 = vld [vmem:[%s162_s16] sm:$0xff] }
  0x12   : > { %v177_v3 = vrot.slane %v175_v2, 4 }
  0x14   : > { %v178_v4 = vadd.f32 %v177_v3, %v175_v2  ;;  %v187_v5 = vmax.f32 %v175_v2, %v177_v3 }
  0x16   : > { %v179_v6 = vrot.slane %v178_v4, 2  ;;  %v188_v7 = vrot.slane %v187_v5, 2 }
  0x18   : > { %v180_v8 = vadd.f32 %v179_v6, %v178_v4  ;;  %v189_v9 = vmax.f32 %v187_v5, %v188_v7 }
  0x1a   : > { %v181_v10 = vrot.slane %v180_v8, 1  ;;  %v190_v11 = vrot.slane %v189_v9, 1 }
  0x1c   : > { %v182_v14 = vadd.f32 %v181_v10, %v180_v8  ;;  %v191_v15 = vmax.f32 %v189_v9, %v190_v11 }
  0x1e   : > { %v183_v16 = vadd.f32 %v182_v14, %v176_v12  ;;  %v192_v17 = vmax.f32 %v185_v13, %v191_v15 }
  0x20   : > { %184 = vst [vmem:[#allocation2] sm:$0x1] %v183_v16  ;;  %193 = vst [vmem:[#allocation3] sm:$0x1] %v192_v17 }
  0x27   : > { %v197_v18 = vld [vmem:[#allocation2] sm:$0x1]  ;;  %v200_v19 = vld [vmem:[#allocation3] sm:$0x1] }
  0x28   : > { %v198_v20 = vmul.f32 0.125, %v197_v18  ;;  %201 = vst [vmem:[%s168_s19] sm:$0x1] %v200_v19 }
  0x2a   : > { %199 = vst [vmem:[%s165_s22] sm:$0x1] %v198_v20 }
  0x2b PF: > { %s13_s11 = sadd.s32 1, %s341_s11   ;;  %s399_s9 = smov %s337_s10 }
  0x2c   : > { %p10_p5 = scmp.ge.s32.totalorder %s13_s11, 4   ;;  %s400_s10 = smov %s402_s12 }
  0x2e   :  { %12 = sbr.rel (!%p10_p5) target bundleno = 2 (0x2), region = 74 }

// kernel: mit_forward.9
= control target key start
LH: loop header
LB: loop body
LE: loop exit
PB: predicated region body
PF: predicated region fallthrough
CT: control target
= control target key end

     0   :  { %v374_v0 = vmov 0.0|0.0   ;;  %vm375_vm0 = vmmov 0   ;;  %v376_v8 = vmov 0.0   ;;  %s531_s3 = inlined_call_operand.vmem [shape: f32[128,128], index: 3, kind: input, shape index: {}]   ;;  %s532_s2 = inlined_call_operand.vmem [shape: f32[128,128], index: 2, kind: input, shape index: {}]   ;;  %s533_s1 = inlined_call_operand.vmem [shape: f32[2,128], index: 1, kind: input, shape index: {}]   ;;  %s534_s0 = inlined_call_operand.vmem [shape: f32[2,128], index: 0, kind: input, shape index: {}]   ;;  %s535_s4 = inlined_call_operand.vmem [shape: f32[1,128], index: 4, kind: input, shape index: {}]   ;;  %s536_s5 = inlined_call_operand.vmem [shape: f32[2,128], index: 5, kind: output, shape index: {}]  }
   0x1   :  { %319 = vmatprep.subr.bf16.mxu0 %v374_v0  ;;  %343 = vmatprep.subr.bf16.mxu1 %v374_v0  ;;  %v38_v1 = vld [vmem:[%s531_s3] sm:$0xff]  ;;  %v39_v2 = vld [vmem:[%s531_s3 + $0x8] sm:$0xff]  ;;  %v40_v6 = vld [vmem:[%s531_s3 + $0x10] sm:$0xff] }
   0x2   :  { %v21_v3 = vld [vmem:[%s532_s2] sm:$0xff]  ;;  %v320_v4 = vpack.c.bf16 %v39_v2, %v38_v1  ;;  %v22_v5 = vld [vmem:[%s532_s2 + $0x8] sm:$0xff]  ;;  %v41_v7 = vld [vmem:[%s531_s3 + $0x18] sm:$0xff]  ;;  %281 = vmatprep.mubr.msk.f32.mxu0 %vm375_vm0, %v376_v8  ;;  %316 = vmatprep.mubr.msk.f32.mxu1 %vm375_vm0, %v376_v8 }
   0x3   :  { %v344_v9 = vpack.c.bf16 %v22_v5, %v21_v3  ;;  %v23_v10 = vld [vmem:[%s532_s2 + $0x10] sm:$0xff]  ;;  %v24_v11 = vld [vmem:[%s532_s2 + $0x18] sm:$0xff]  ;;  %v323_v12 = vpack.c.bf16 %v41_v7, %v40_v6  ;;  %v42_v14 = vld [vmem:[%s531_s3 + $0x20] sm:$0xff] }
   0x4   :  { %321 = vmatpush3.bf16.msra.mxu0 %v320_v4  ;;  %v347_v13 = vpack.c.bf16 %v24_v11, %v23_v10  ;;  %v43_v15 = vld [vmem:[%s531_s3 + $0x28] sm:$0xff]  ;;  %v25_v16 = vld [vmem:[%s532_s2 + $0x20] sm:$0xff]  ;;  %v44_v20 = vld [vmem:[%s531_s3 + $0x30] sm:$0xff] }
   0x5   :  { %345 = vmatpush3.bf16.msra.mxu1 %v344_v9  ;;  %322 = vmatprep.subr.bf16.mxu0 %v374_v0  ;;  %v26_v17 = vld [vmem:[%s532_s2 + $0x28] sm:$0xff]  ;;  %v326_v18 = vpack.c.bf16 %v43_v15, %v42_v14  ;;  %v45_v21 = vld [vmem:[%s531_s3 + $0x38] sm:$0xff]  ;;  %v27_v22 = vld [vmem:[%s532_s2 + $0x30] sm:$0xff] }
   0x6   :  { %346 = vmatprep.subr.bf16.mxu1 %v374_v0  ;;  %v350_v19 = vpack.c.bf16 %v26_v17, %v25_v16  ;;  %v28_v23 = vld [vmem:[%s532_s2 + $0x38] sm:$0xff]  ;;  %v329_v24 = vpack.c.bf16 %v45_v21, %v44_v20  ;;  %v46_v26 = vld [vmem:[%s531_s3 + $0x40] sm:$0xff]  ;;  %v47_v27 = vld [vmem:[%s531_s3 + $0x48] sm:$0xff] }
   0x7   :  { %v353_v25 = vpack.c.bf16 %v28_v23, %v27_v22  ;;  %v29_v28 = vld [vmem:[%s532_s2 + $0x40] sm:$0xff]  ;;  %v30_v29 = vld [vmem:[%s532_s2 + $0x48] sm:$0xff]  ;;  %v332_v30 = vpack.c.bf16 %v47_v27, %v46_v26  ;;  %v48_v32 = vld [vmem:[%s531_s3 + $0x50] sm:$0xff] }
   0x8   :  { %324 = vmatpush3.bf16.msra.mxu0 %v323_v12  ;;  %v356_v31 = vpack.c.bf16 %v30_v29, %v29_v28  ;;  %v49_v33 = vld [vmem:[%s531_s3 + $0x58] sm:$0xff]  ;;  %v31_v34 = vld [vmem:[%s532_s2 + $0x50] sm:$0xff]  ;;  %v50_v38 = vld [vmem:[%s531_s3 + $0x60] sm:$0xff] }
   0x9   :  { %348 = vmatpush3.bf16.msra.mxu1 %v347_v13  ;;  %325 = vmatprep.subr.bf16.mxu0 %v374_v0  ;;  %v32_v35 = vld [vmem:[%s532_s2 + $0x58] sm:$0xff]  ;;  %v335_v36 = vpack.c.bf16 %v49_v33, %v48_v32  ;;  %v51_v39 = vld [vmem:[%s531_s3 + $0x68] sm:$0xff]  ;;  %v33_v40 = vld [vmem:[%s532_s2 + $0x60] sm:$0xff] }
   0xa   :  { %349 = vmatprep.subr.bf16.mxu1 %v374_v0  ;;  %v359_v37 = vpack.c.bf16 %v32_v35, %v31_v34  ;;  %v34_v41 = vld [vmem:[%s532_s2 + $0x68] sm:$0xff]  ;;  %v338_v42 = vpack.c.bf16 %v51_v39, %v50_v38  ;;  %v52_v44 = vld [vmem:[%s531_s3 + $0x70] sm:$0xff]  ;;  %v53_v45 = vld [vmem:[%s531_s3 + $0x78] sm:$0xff] }
   0xb   :  { %v362_v43 = vpack.c.bf16 %v34_v41, %v33_v40  ;;  %v35_v46 = vld [vmem:[%s532_s2 + $0x70] sm:$0xff]  ;;  %v36_v47 = vld [vmem:[%s532_s2 + $0x78] sm:$0xff]  ;;  %v341_v48 = vpack.c.bf16 %v53_v45, %v52_v44  ;;  %v37_v50 = vld [vmem:[%s533_s1] sm:$0x3] }
   0xc   :  { %327 = vmatpush3.bf16.msra.mxu0 %v326_v18  ;;  %v365_v49 = vpack.c.bf16 %v36_v47, %v35_v46  ;;  %v20_v51 = vld [vmem:[%s534_s0] sm:$0x3] }
   0xd   :  { %351 = vmatpush3.bf16.msra.mxu1 %v350_v19  ;;  %328 = vmatprep.subr.bf16.mxu0 %v374_v0  ;;  %v213_v54 = vld [vmem:[%s535_s4] ss:$0 sm:$0xff] }
   0xe   :  { %352 = vmatprep.subr.bf16.mxu1 %v374_v0 }
  0x10   :  { %330 = vmatpush3.bf16.msra.mxu0 %v329_v24 }
  0x11   :  { %354 = vmatpush3.bf16.msra.mxu1 %v353_v25  ;;  %331 = vmatprep.subr.bf16.mxu0 %v374_v0 }
  0x12   :  { %355 = vmatprep.subr.bf16.mxu1 %v374_v0 }
  0x14   :  { %333 = vmatpush3.bf16.msra.mxu0 %v332_v30 }
  0x15   :  { %357 = vmatpush3.bf16.msra.mxu1 %v356_v31  ;;  %334 = vmatprep.subr.bf16.mxu0 %v374_v0 }
  0x16   :  { %358 = vmatprep.subr.bf16.mxu1 %v374_v0 }
  0x18   :  { %336 = vmatpush3.bf16.msra.mxu0 %v335_v36 }
  0x19   :  { %360 = vmatpush3.bf16.msra.mxu1 %v359_v37  ;;  %337 = vmatprep.subr.bf16.mxu0 %v374_v0 }
  0x1a   :  { %361 = vmatprep.subr.bf16.mxu1 %v374_v0 }
  0x1c   :  { %339 = vmatpush3.bf16.msra.mxu0 %v338_v42 }
  0x1d   :  { %363 = vmatpush3.bf16.msra.mxu1 %v362_v43  ;;  %340 = vmatprep.subr.bf16.mxu0 %v374_v0 }
  0x1e   :  { %364 = vmatprep.subr.bf16.mxu1 %v374_v0 }
  0x20   :  { %342 = vmatpush3.bf16.msra.mxu0 %v341_v48 }
  0x21   :  { %366 = vmatpush3.bf16.msra.mxu1 %v365_v49 }
  0x23   :  { %282 = vmatmul.mubr.f32.vlgmr.msra.gmra.mrb[0].mxu0 %v37_v50 }
  0x24   :  { %317 = vmatmul.mubr.f32.vlgmr.msra.gmra.mrb[0].mxu1 %v20_v51 }
  0xf6   :  { %v120_v52 = vpop.f32.mrb[0].mxu0 }
  0xf7   :  { %v190_v53 = vpop.f32.mrb[0].mxu1  ;;  %v283_v55 = vpop.f32.mrb[1].mxu0 }
  0xf8   :  { %v191_v56 = vadd.f32 %v190_v53, %v120_v52  ;;  %v318_v57 = vpop.f32.mrb[1].mxu1 }
  0xfa   :  { %v201_v58 = vadd.f32 %v213_v54, %v191_v56 }
  0xfc   :  { %v214_v59 = vmul.f32 -1.442695, %v201_v58 }
  0xfe   :  { %370 = vpow2.f32 %v214_v59 }
 0x108   :  { %v371_v60 = vpop.eup %370 }
 0x109   :  { %v205_v61 = vadd.f32 1.0, %v371_v60 }
 0x10b   :  { %372 = vrcp.f32 %v205_v61 }
 0x115   :  { %v373_v62 = vpop.eup %372 }
 0x116   :  { %208 = vst [vmem:[%s536_s5] sm:$0x3] %v373_v62 }

// kernel: mit_forward.11
= control target key start
LH: loop header
LB: loop body
LE: loop exit
PB: predicated region body
PF: predicated region fallthrough
CT: control target
= control target key end

     0   :  { %s372_s0 = inlined_call_operand.vmem [shape: f32[16,128], index: 0, kind: input, shape index: {}]   ;;  %s373_s1 = inlined_call_operand.vmem [shape: f32[16,128], index: 1, kind: input, shape index: {}]   ;;  %s374_s2 = inlined_call_operand.vmem [shape: f32[128,128], index: 2, kind: input, shape index: {}]   ;;  %s375_s3 = inlined_call_operand.vmem [shape: f32[1,128], index: 3, kind: input, shape index: {}]   ;;  %s376_s4 = inlined_call_operand.hbm [shape: f32[16,128], index: 4, kind: output, shape index: {}]  }
   0x1   :  { %v24_v0 = vld [vmem:[%s374_s2] sm:$0xff]  ;;  %v25_v1 = vld [vmem:[%s374_s2 + $0x8] sm:$0xff]  ;;  %v26_v2 = vld [vmem:[%s374_s2 + $0x10] sm:$0xff] }
   0x2   :  { %v206_v3 = vpack.c.bf16 %v25_v1, %v24_v0  ;;  %v27_v4 = vld [vmem:[%s374_s2 + $0x18] sm:$0xff]  ;;  %v28_v6 = vld [vmem:[%s374_s2 + $0x20] sm:$0xff]  ;;  %v29_v7 = vld [vmem:[%s374_s2 + $0x28] sm:$0xff] }
   0x3   :  { %v210_v5 = vpack.c.bf16 %v27_v4, %v26_v2  ;;  %v214_v8 = vpack.c.bf16 %v29_v7, %v28_v6  ;;  %v18_v9 = vld [vmem:[%s372_s0] sm:$0xff]  ;;  %v30_v11 = vld [vmem:[%s374_s2 + $0x30] sm:$0xff]  ;;  %v31_v12 = vld [vmem:[%s374_s2 + $0x38] sm:$0xff] }
   0x4   :  { %207 = vmatprep.subr.bf16.mxu0 %v206_v3  ;;  %v20_v10 = vld [vmem:[%s373_s1] sm:$0xff] }
   0x5   :  { %209 = vmatpush3.bf16.msra.mxu0 %v206_v3  ;;  %v22_v13 = vmul.f32 %v20_v10, %v18_v9 }
   0x6   :  { %211 = vmatprep.subr.bf16.mxu0 %v210_v5 }
   0x7   :  { %9 = vsyncpa [#allocation3], 0  ;;  %203 = vmatprep.mubr.f32.mxu0 %v22_v13  ;;  %v218_v14 = vpack.c.bf16 %v31_v12, %v30_v11  ;;  %v32_v15 = vld [vmem:[%s374_s2 + $0x40] sm:$0xff]  ;;  %v33_v16 = vld [vmem:[%s374_s2 + $0x48] sm:$0xff] }
   0x8   :  { %v222_v17 = vpack.c.bf16 %v33_v16, %v32_v15  ;;  %v34_v18 = vld [vmem:[%s374_s2 + $0x50] sm:$0xff]  ;;  %v35_v19 = vld [vmem:[%s374_s2 + $0x58] sm:$0xff]  ;;  %v36_v21 = vld [vmem:[%s374_s2 + $0x60] sm:$0xff] }
   0x9   :  { %213 = vmatpush3.bf16.msra.mxu0 %v210_v5  ;;  %v226_v20 = vpack.c.bf16 %v35_v19, %v34_v18  ;;  %v37_v22 = vld [vmem:[%s374_s2 + $0x68] sm:$0xff]  ;;  %v38_v24 = vld [vmem:[%s374_s2 + $0x70] sm:$0xff]  ;;  %v39_v25 = vld [vmem:[%s374_s2 + $0x78] sm:$0xff] }
   0xa   :  { %215 = vmatprep.subr.bf16.mxu0 %v214_v8  ;;  %v230_v23 = vpack.c.bf16 %v37_v22, %v36_v21  ;;  %v234_v26 = vpack.c.bf16 %v39_v25, %v38_v24  ;;  %v19_v27 = vld [vmem:[%s372_s0 + $0x8] sm:$0xff]  ;;  %v152_v30 = vld [vmem:[%s375_s3] ss:$0 sm:$0xff]  ;;  %s269_s0 = smov [#allocation2]  }
   0xb   :  { %v21_v28 = vld [vmem:[%s373_s1 + $0x8] sm:$0xff]  ;;  %s141_s1 = sshll.u32 %s269_s0, 4  ;;  %s142_s1 = int_to_ptr.vmem [resolvable:$true] %s141_s1 }
   0xc   :  { %v23_v29 = vmul.f32 %v21_v28, %v19_v27  ;;  %s245_s2 = scalar_lea.vmem %s142_s1, 256  ;;  %p250_p1 = scmp.lt.s32.totalorder %s142_s1, %s142_s1 }
   0xd   :  { %217 = vmatpush3.bf16.msra.mxu0 %v214_v8  ;;  %p246_p0 = scmp.ne.s32.totalorder %s142_s1, %s245_s2  ;;  %p251_p2 = scmp.lt.s32.totalorder %s245_s2, %s245_s2 }
   0xe   :  { %219 = vmatprep.subr.bf16.mxu0 %v218_v14 }
   0xf   :  { %p252_p3 = por %p251_p2, %p250_p1 }
  0x11   :  { %221 = vmatpush3.bf16.msra.mxu0 %v218_v14  ;;  %p253_p4 = pnand %p252_p3, %p246_p0 }
  0x12   :  { %223 = vmatprep.subr.bf16.mxu0 %v222_v17 }
  0x15   :  { %225 = vmatpush3.bf16.msra.mxu0 %v222_v17 }
  0x16   :  { %227 = vmatprep.subr.bf16.mxu0 %v226_v20 }
  0x19   :  { %229 = vmatpush3.bf16.msra.mxu0 %v226_v20 }
  0x1a   :  { %231 = vmatprep.subr.bf16.mxu0 %v230_v23 }
  0x1d   :  { %233 = vmatpush3.bf16.msra.mxu0 %v230_v23 }
  0x1e   :  { %235 = vmatprep.subr.bf16.mxu0 %v234_v26 }
  0x21   :  { %237 = vmatpush3.bf16.msra.mxu0 %v234_v26 }
  0x24   :  { %204 = vmatmul.mubr.f32.vlgmr.msra.gmra.mrb[0].mxu0 %v23_v29 }
  0xf7   :  { %v205_v31 = vpop.f32.mrb[0].mxu0 }
  0xf8   :  { %v119_v32 = vadd.f32 %v205_v31, %v152_v30  ;;  %v113_v33 = vpop.f32.mrb[1].mxu0 }
  0xf9   :  { %v114_v34 = vadd.f32 %v152_v30, %v113_v33 }
  0xfa   :  { %v125_v35 = vmul.f32 0.70710677, %v119_v32  ;;  %v123_v39 = vmul.f32 0.5, %v119_v32 }
  0xfb   :  { %v124_v36 = vmul.f32 0.70710677, %v114_v34  ;;  %v122_v41 = vmul.f32 0.5, %v114_v34 }
  0xfc   :  { %241 = verf.f32 %v125_v35 }
  0xfd   :  { %243 = verf.f32 %v124_v36 }
 0x106   :  { %v242_v37 = vpop.eup %241 }
 0x107   :  { %v244_v38 = vpop.eup %243  ;;  %v129_v40 = vadd.f32 1.0, %v242_v37 }
 0x108   :  { %v128_v42 = vadd.f32 1.0, %v244_v38 }
 0x109   :  { %v131_v43 = vmul.f32 %v129_v40, %v123_v39 }
 0x10a   :  { %v130_v44 = vmul.f32 %v128_v42, %v122_v41 }
 0x10b   :  { %v133_v45 = vadd.f32 %v131_v43, %v23_v29 }
 0x10c   :  { %v132_v46 = vadd.f32 %v130_v44, %v22_v13 }
 0x10d   :  { %135 = vst [vmem:[#allocation2 + $0x8] sm:$0xff] %v133_v45 }
 0x10e   :  { %134 = vst [vmem:[#allocation2] sm:$0xff] %v132_v46 }
 0x10f   :  { %256 = shalt.err (!%p253_p4)
}
 0x110   :  { %s257_s6 = scalar_lea.hbm %s376_s4, 256 }
 0x111   :  { %p258_p5 = scmp.ne.s32.totalorder %s376_s4, %s257_s6  ;;  %p261_p6 = scmp.lt.u32.totalorder %s257_s6, %s376_s4 }
 0x113   :  { %p263_p7 = pnand %p261_p6, %p258_p5 }
 0x115   :  { %266 = shalt.err (!%p263_p7)
}
 0x116   :  { %s270_s11 = smov 128   ;;  %s271_s12 = smov 8  }
 0x117   :  { %147 = dma.vmem_to_hbm [thread:$0]  %s142_s1, 256, %s376_s4, [#allocation3], %s270_s11, %s270_s11, %s271_s12  }
 0x118   :  { %267 = dma.done.wait [#allocation3], 256  }
 0x119   :  { %268 = vsyncadd [#allocation3], 4294967040 }
 0x11a   :  { %151 = vsyncpa [#allocation3], 1 }

</bundles_post_ra>
